<compile_context>
chip_gen: v7x
topology: tpu7x:2x2x1
jax: 0.10.0
libtpu: 0.0.40
codegen_flags: <defaults>
</compile_context>

<pallas_src>
import math

import numpy as np
import jax
import jax.numpy as jnp
from jax.experimental import pallas as pl
from jax.experimental.pallas import tpu as pltpu

_EPS = 1e-5
_MXU_DTYPE = jnp.bfloat16          # MXU-edge operand dtype (f32 accumulation)


# ----------------------------------------------------------------------------
# Planning pass: shape inference + host-side parameter re-layout.
# Internal activation layout inside the fused kernel is always a 2-D f32 value:
#   'spatial' mode : (N*H, W*C)   -- lanes = (w, c), w major / c minor
#   'linear'  mode : (N*H, F*C)   -- after nn.Linear over the W axis
# ----------------------------------------------------------------------------
def _plan_block(structure, params, in_shape):
    N, C, H, W = in_shape                          # NCHW as PyTorch sees it
    mode, F = "spatial", None
    ops, mats, rows = [], [], []

    def add_mat(a):
        mats.append(a)
        return len(mats) - 1

    def add_row(v):
        rows.append(np.asarray(v, np.float32).reshape(-1))
        return len(rows) - 1

    for idx, (line, p) in enumerate(zip(structure, params)):
        t = line[0]
        if t == "conv":
            cin, cout = int(line[1]), int(line[2])
            assert mode == "spatial" and cin == C
            w = np.asarray(p["w"], np.float32)                 # (3, 3, cin, cout)
            taps = []
            for dh in (-1, 0, 1):                              # one banded matrix per row tap
                M = np.zeros((W * cin, W * cout), np.float32)
                for wo in range(W):
                    for dw in (-1, 0, 1):
                        wi = wo + dw
                        if 0 <= wi < W:
                            M[wi * cin:(wi + 1) * cin, wo * cout:(wo + 1) * cout] = w[dh + 1, dw + 1]
                taps.append(add_mat(jnp.asarray(M, _MXU_DTYPE)))
            # conv bias followed immediately by a train-mode BN cancels exactly.
            next_is_norm = idx + 1 < len(structure) and structure[idx + 1][0] == "norm"
            bias = None if next_is_norm else add_row(np.tile(np.asarray(p["b"], np.float32), W))
            ops.append(dict(kind="conv", H=H, taps=tuple(taps), bias=bias, out_w=W * cout))
            C = cout
        elif t == "norm":
            c = int(line[1])
            # TODO(synk): BatchNorm placed after a linear layer is unsupported here.
            assert mode == "spatial" and c == C
            L = W * C
            lane = np.arange(L)
            red = (lane[:, None] % C == lane[None, :] % C).astype(np.float32)   # (L, L) 0/1
            ops.append(dict(kind="bn", L=L, count=float(N * H * W),
                            reduce=add_mat(jnp.asarray(red, jnp.float32)),
                            gamma=add_row(np.tile(np.asarray(p["gamma"], np.float32), W)),
                            beta=add_row(np.tile(np.asarray(p["beta"], np.float32), W))))
        elif t in ("relu", "sigmoid", "drop"):
            ops.append(dict(kind=t))
        elif t == "maxpool":
            before, after = int(line[1]), int(line[2])
            assert mode == "spatial"
            if abs(after - before) == 1:
                size, stride = 2, 1
            elif before % after == 0:
                size = stride = before // after
            else:
                raise ValueError("unsupported maxpool spec")
            Ho = (H - size) // stride + 1
            Wo = (W - size) // stride + 1
            S = np.zeros((W * C, Wo * C), np.float32)          # lane compaction (0/1)
            for wo in range(Wo):
                for c in range(C):
                    S[stride * wo * C + c, wo * C + c] = 1.0
            R = np.zeros((N * Ho, N * H), np.float32)          # row compaction (0/1)
            for n in range(N):
                for ho in range(Ho):
                    R[n * Ho + ho, n * H + stride * ho] = 1.0
            ops.append(dict(kind="pool", size=size, C=C,
                            sel_l=add_mat(jnp.asarray(S, jnp.float32)),
                            sel_r=add_mat(jnp.asarray(R, jnp.float32))))
            H, W = Ho, Wo
        elif t == "linear":
            din, dout = int(line[1]), int(line[2])
            # nn.Linear on an NCHW tensor acts on the last (W / feature) axis.
            src = W if mode == "spatial" else F
            assert din == src
            wk = np.kron(np.asarray(p["w"], np.float32), np.eye(C, dtype=np.float32))
            ops.append(dict(kind="linear", out_l=dout * C,
                            w=add_mat(jnp.asarray(wk, _MXU_DTYPE)),
                            b=add_row(np.repeat(np.asarray(p["b"], np.float32), C))))
            mode, F = "linear", dout
        else:
            raise ValueError(f"unknown layer type {t!r}")

    if mode == "spatial":
        out2d = (N * H, W * C)
        info = dict(mode=mode, N=N, H=H, W=W, C=C)
    else:
        out2d = (N * H, F * C)
        info = dict(mode=mode, N=N, H=H, F=F, C=C)

    # Pack all small per-channel/per-lane vectors into a single (n_rows, Lmax)
    # array: one DMA / one VMEM tile instead of one per parameter.
    if rows:
        Lmax = max(r.shape[0] for r in rows)
        packed = np.zeros((len(rows), Lmax), np.float32)
        for i, r in enumerate(rows):
            packed[i, :r.shape[0]] = r
    else:
        packed = np.zeros((1, 1), np.float32)
    return ops, mats, jnp.asarray(packed), out2d, info


# ----------------------------------------------------------------------------
# Fused kernel builder (everything runs on the lane-dense 2-D activation).
# ----------------------------------------------------------------------------
def _build_kernel(ops, n_mats):
    def kernel(x_ref, rows_ref, *rest):
        mat_refs = rest[:n_mats]
        o_ref = rest[n_mats]

        x2 = x_ref[...]                                  # lane-dense (N*H, W*C) f32
        for op in ops:
            k = op["kind"]
            if k == "conv":
                H = op["H"]
                nh, L = x2.shape
                h = jax.lax.broadcasted_iota(jnp.int32, (nh, L), 0) % H
                # Vertical taps built in-register: sublane roll (XLU) + halo mask (VPU).
                x_up = jnp.where(h == 0, 0.0, pltpu.roll(x2, shift=1, axis=0))
                x_dn = jnp.where(h == H - 1, 0.0, pltpu.roll(x2, shift=nh - 1, axis=0))
                # Horizontal taps + channel mix folded into banded matrices (bf16 MXU).
                y = jnp.dot(x_up.astype(_MXU_DTYPE), mat_refs[op["taps"][0]][...],
                            preferred_element_type=jnp.float32)
                y = y + jnp.dot(x2.astype(_MXU_DTYPE), mat_refs[op["taps"][1]][...],
                                preferred_element_type=jnp.float32)
                y = y + jnp.dot(x_dn.astype(_MXU_DTYPE), mat_refs[op["taps"][2]][...],
                                preferred_element_type=jnp.float32)
                if op["bias"] is not None:
                    y = y + rows_ref[op["bias"]:op["bias"] + 1, 0:op["out_w"]]
                x2 = y
            elif k == "bn":
                L = op["L"]
                red = mat_refs[op["reduce"]][...]
                inv_n = 1.0 / op["count"]
                s = jnp.sum(x2, axis=0, keepdims=True)                 # (1, L)
                sq = jnp.sum(x2 * x2, axis=0, keepdims=True)           # (1, L) single pass
                mean = jnp.dot(s, red, preferred_element_type=jnp.float32) * inv_n
                ex2 = jnp.dot(sq, red, preferred_element_type=jnp.float32) * inv_n
                var = jnp.maximum(ex2 - mean * mean, 0.0)
                gamma = rows_ref[op["gamma"]:op["gamma"] + 1, 0:L]
                beta = rows_ref[op["beta"]:op["beta"] + 1, 0:L]
                scale = gamma * jax.lax.rsqrt(var + _EPS)
                x2 = x2 * scale + (beta - mean * scale)                # one FMA per element
            elif k == "relu":
                x2 = jnp.maximum(x2, 0.0)
            elif k == "sigmoid":
                x2 = pl.reciprocal(1.0 + jnp.exp(-x2), approx=True)    # EUP exp + EUP recip
            elif k == "drop":
                pass  # TODO(synk): Dropout2d train-mode channel masking not implemented (identity).
            elif k == "pool":
                size, C = op["size"], op["C"]
                nh, L = x2.shape
                m = x2
                for j in range(1, size):                               # max over w window (lane roll)
                    m = jnp.maximum(m, pltpu.roll(x2, shift=L - j * C, axis=1))
                mm = m
                for i in range(1, size):                               # max over h window (sublane roll)
                    mm = jnp.maximum(mm, pltpu.roll(m, shift=nh - i, axis=0))
                # Exact 0/1 selection matmuls compact lanes then rows (f32 on MXU).
                mm = jnp.dot(mm, mat_refs[op["sel_l"]][...],
                             preferred_element_type=jnp.float32)
                x2 = jnp.dot(mat_refs[op["sel_r"]][...], mm,
                             preferred_element_type=jnp.float32)
            elif k == "linear":
                # kron(W_lin, I_C): contracts the W axis, lane-dense F*C output.
                x2 = jnp.dot(x2.astype(_MXU_DTYPE), mat_refs[op["w"]][...],
                             preferred_element_type=jnp.float32)
                x2 = x2 + rows_ref[op["b"]:op["b"] + 1, 0:op["out_l"]]
        o_ref[...] = x2

    return kernel


# ----------------------------------------------------------------------------
# Forward: one fused pallas_call + tiny wrapper reshapes/transposes.
# ----------------------------------------------------------------------------
def basic_block_forward(x_nchw, structure, params):
    N, C, H, W = x_nchw.shape
    ops, mats, rows, out2d, info = _plan_block(structure, params, (N, C, H, W))
    # NCHW -> lane-dense (N*H, W*C): a few-KiB wrapper-side relayout.
    x2 = jnp.transpose(x_nchw.astype(jnp.float32), (0, 2, 3, 1)).reshape(N * H, W * C)

    kernel = _build_kernel(ops, len(mats))
    y2 = pl.pallas_call(
        kernel,
        out_shape=jax.ShapeDtypeStruct(out2d, jnp.float32),
        compiler_params=pltpu.CompilerParams(vmem_limit_bytes=32 * 1024 * 1024),
    )(x2, rows, *mats)

    if info["mode"] == "spatial":
        y = y2.reshape(info["N"], info["H"], info["W"], info["C"])
    else:
        y = y2.reshape(info["N"], info["H"], info["F"], info["C"])
    return jnp.transpose(y, (0, 3, 1, 2))                  # -> NCHW(-style) output


# ----------------------------------------------------------------------------
# Parameter init (PyTorch-style uniform bounds)
# ----------------------------------------------------------------------------
def init_params(structure, key):
    params = []
    for line in structure:
        t = line[0]
        if t == "conv":
            cin, cout = int(line[1]), int(line[2])
            key, k1, k2 = jax.random.split(key, 3)
            bound = 1.0 / math.sqrt(cin * 9)
            params.append({
                "w": jax.random.uniform(k1, (3, 3, cin, cout), jnp.float32, -bound, bound),
                "b": jax.random.uniform(k2, (cout,), jnp.float32, -bound, bound),
            })
        elif t == "norm":
            c = int(line[1])
            params.append({"gamma": jnp.ones((c,), jnp.float32),
                           "beta": jnp.zeros((c,), jnp.float32)})
        elif t == "linear":
            din, dout = int(line[1]), int(line[2])
            key, k1, k2 = jax.random.split(key, 3)
            bound = 1.0 / math.sqrt(din)
            params.append({
                "w": jax.random.uniform(k1, (din, dout), jnp.float32, -bound, bound),
                "b": jax.random.uniform(k2, (dout,), jnp.float32, -bound, bound),
            })
        else:
            params.append(None)
    return params


if __name__ == "__main__":
    structure = [
        ("conv", "4", "8"),        # Conv2d(4, 8, 3x3, padding=1)
        ("norm", "8"),             # BatchNorm2d(8)
        ("relu",),
        ("maxpool", "16", "8"),    # -> MaxPool2d(2, stride=2)
        ("conv", "8", "8"),
        ("sigmoid",),
        ("linear", "8", "16"),     # Linear on last (W) axis: 8 -> 16
    ]
    key = jax.random.PRNGKey(0)
    kx, kp = jax.random.split(key)
    x = jax.random.normal(kx, (2, 4, 16, 16), jnp.float32)     # NCHW input
    params = init_params(structure, kp)

    fwd = jax.jit(lambda xx: basic_block_forward(xx, structure, params))
    y = jax.block_until_ready(fwd(x))
    assert y.shape == (2, 8, 8, 16), y.shape
    assert bool(jnp.all(jnp.isfinite(y)))
    print("KERNEL_OK")
</pallas_src>

<mosaic_0001>
module attributes {stable_mosaic.version = 11 : i64} {
  func.func @kernel(%arg0: memref<32x64xf32, #tpu.memory_space<vmem>>, %arg1: memref<4x128xf32, #tpu.memory_space<vmem>>, %arg2: memref<64x128xbf16, #tpu.memory_space<vmem>>, %arg3: memref<64x128xbf16, #tpu.memory_space<vmem>>, %arg4: memref<64x128xbf16, #tpu.memory_space<vmem>>, %arg5: memref<128x128xf32, #tpu.memory_space<vmem>>, %arg6: memref<128x64xf32, #tpu.memory_space<vmem>>, %arg7: memref<16x32xf32, #tpu.memory_space<vmem>>, %arg8: memref<64x64xbf16, #tpu.memory_space<vmem>>, %arg9: memref<64x64xbf16, #tpu.memory_space<vmem>>, %arg10: memref<64x64xbf16, #tpu.memory_space<vmem>>, %arg11: memref<64x128xbf16, #tpu.memory_space<vmem>>, %arg12: memref<16x128xf32, #tpu.memory_space<vmem>>) attributes {dimension_semantics = [], scalar_prefetch = 0 : i64, scratch_operands = 0 : i64, tpu.core_type = #tpu.core_type<tc>} {
    %c0 = arith.constant 0 : index
    %c0_0 = arith.constant 0 : index
    %0 = vector.load %arg0[%c0, %c0_0] : memref<32x64xf32, #tpu.memory_space<vmem>>, vector<32x64xf32>
    %1 = tpu.iota {dimensions = array<i32: 0>} : vector<32x64xi32>
    %c16_i32 = arith.constant 16 : i32
    %c0_i32 = arith.constant 0 : i32
    %2 = arith.cmpi eq, %c16_i32, %c0_i32 : i32
    %c1_i32 = arith.constant 1 : i32
    %3 = arith.select %2, %c1_i32, %c16_i32 : i32
    %4 = vector.broadcast %3 : i32 to vector<32x64xi32>
    %5 = arith.remsi %1, %4 : vector<32x64xi32>
    %c0_i32_1 = arith.constant 0 : i32
    %6 = vector.broadcast %c0_i32_1 : i32 to vector<32x64xi32>
    %7 = arith.cmpi ne, %5, %6 : vector<32x64xi32>
    %c0_i32_2 = arith.constant 0 : i32
    %8 = vector.broadcast %c0_i32_2 : i32 to vector<32x64xi32>
    %9 = arith.cmpi slt, %5, %8 : vector<32x64xi32>
    %c0_i32_3 = arith.constant 0 : i32
    %10 = arith.cmpi slt, %3, %c0_i32_3 : i32
    %11 = vector.broadcast %10 : i1 to vector<32x64xi1>
    %12 = vector.broadcast %11 : vector<32x64xi1> to vector<32x64xi1>
    %13 = arith.xori %9, %12 : vector<32x64xi1>
    %14 = arith.andi %13, %7 : vector<32x64xi1>
    %15 = vector.broadcast %3 : i32 to vector<32x64xi32>
    %16 = arith.addi %5, %15 : vector<32x64xi32>
    %17 = arith.select %14, %16, %5 : vector<32x64xi1>, vector<32x64xi32>
    %c0_i32_4 = arith.constant 0 : i32
    %18 = vector.broadcast %c0_i32_4 : i32 to vector<32x64xi32>
    %19 = arith.cmpi eq, %17, %18 : vector<32x64xi32>
    %c1_i32_5 = arith.constant 1 : i32
    %20 = tpu.dynamic_rotate %0 by %c1_i32_5 dim 0 : vector<32x64xf32>, i32 -> vector<32x64xf32>
    %cst = arith.constant 0.000000e+00 : f32
    %21 = vector.broadcast %cst : f32 to vector<32x64xf32>
    %22 = arith.select %19, %21, %20 : vector<32x64xi1>, vector<32x64xf32>
    %c15_i32 = arith.constant 15 : i32
    %23 = vector.broadcast %c15_i32 : i32 to vector<32x64xi32>
    %24 = arith.cmpi eq, %17, %23 : vector<32x64xi32>
    %c31_i32 = arith.constant 31 : i32
    %25 = tpu.dynamic_rotate %0 by %c31_i32 dim 0 : vector<32x64xf32>, i32 -> vector<32x64xf32>
    %cst_6 = arith.constant 0.000000e+00 : f32
    %26 = vector.broadcast %cst_6 : f32 to vector<32x64xf32>
    %27 = arith.select %24, %26, %25 : vector<32x64xi1>, vector<32x64xf32>
    %28 = arith.truncf %22 : vector<32x64xf32> to vector<32x64xbf16>
    %c0_7 = arith.constant 0 : index
    %c0_8 = arith.constant 0 : index
    %29 = vector.load %arg2[%c0_7, %c0_8] : memref<64x128xbf16, #tpu.memory_space<vmem>>, vector<64x128xbf16>
    %cst_9 = arith.constant dense<0.000000e+00> : vector<32x128xf32>
    %30 = tpu.matmul %28, %29, %cst_9 {dimension_numbers = #tpu.dot_dimension_numbers<[1], [0], [0], [1], [0, 0, 1, 1], [], []>} : vector<32x64xbf16>, vector<64x128xbf16>, vector<32x128xf32> -> vector<32x128xf32>
    %31 = arith.truncf %0 : vector<32x64xf32> to vector<32x64xbf16>
    %c0_10 = arith.constant 0 : index
    %c0_11 = arith.constant 0 : index
    %32 = vector.load %arg3[%c0_10, %c0_11] : memref<64x128xbf16, #tpu.memory_space<vmem>>, vector<64x128xbf16>
    %cst_12 = arith.constant dense<0.000000e+00> : vector<32x128xf32>
    %33 = tpu.matmul %31, %32, %cst_12 {dimension_numbers = #tpu.dot_dimension_numbers<[1], [0], [0], [1], [0, 0, 1, 1], [], []>} : vector<32x64xbf16>, vector<64x128xbf16>, vector<32x128xf32> -> vector<32x128xf32>
    %34 = arith.addf %30, %33 : vector<32x128xf32>
    %35 = arith.truncf %27 : vector<32x64xf32> to vector<32x64xbf16>
    %c0_13 = arith.constant 0 : index
    %c0_14 = arith.constant 0 : index
    %36 = vector.load %arg4[%c0_13, %c0_14] : memref<64x128xbf16, #tpu.memory_space<vmem>>, vector<64x128xbf16>
    %cst_15 = arith.constant dense<0.000000e+00> : vector<32x128xf32>
    %37 = tpu.matmul %35, %36, %cst_15 {dimension_numbers = #tpu.dot_dimension_numbers<[1], [0], [0], [1], [0, 0, 1, 1], [], []>} : vector<32x64xbf16>, vector<64x128xbf16>, vector<32x128xf32> -> vector<32x128xf32>
    %38 = arith.addf %34, %37 : vector<32x128xf32>
    %c0_16 = arith.constant 0 : index
    %c0_17 = arith.constant 0 : index
    %39 = vector.load %arg5[%c0_16, %c0_17] : memref<128x128xf32, #tpu.memory_space<vmem>>, vector<128x128xf32>
    %cst_18 = arith.constant dense<0.000000e+00> : vector<128xf32>
    %40 = vector.multi_reduction <add>, %38, %cst_18 [0] : vector<32x128xf32> to vector<128xf32>
    %41 = vector.shape_cast %40 : vector<128xf32> to vector<1x128xf32>
    %42 = arith.mulf %38, %38 : vector<32x128xf32>
    %cst_19 = arith.constant dense<0.000000e+00> : vector<128xf32>
    %43 = vector.multi_reduction <add>, %42, %cst_19 [0] : vector<32x128xf32> to vector<128xf32>
    %44 = vector.shape_cast %43 : vector<128xf32> to vector<1x128xf32>
    %cst_20 = arith.constant dense<0.000000e+00> : vector<1x128xf32>
    %45 = tpu.matmul %41, %39, %cst_20 {dimension_numbers = #tpu.dot_dimension_numbers<[1], [0], [0], [1], [0, 0, 1, 1], [], []>} : vector<1x128xf32>, vector<128x128xf32>, vector<1x128xf32> -> vector<1x128xf32>
    %cst_21 = arith.constant 0.001953125 : f32
    %46 = vector.broadcast %cst_21 : f32 to vector<1x128xf32>
    %47 = arith.mulf %45, %46 : vector<1x128xf32>
    %cst_22 = arith.constant dense<0.000000e+00> : vector<1x128xf32>
    %48 = tpu.matmul %44, %39, %cst_22 {dimension_numbers = #tpu.dot_dimension_numbers<[1], [0], [0], [1], [0, 0, 1, 1], [], []>} : vector<1x128xf32>, vector<128x128xf32>, vector<1x128xf32> -> vector<1x128xf32>
    %cst_23 = arith.constant 0.001953125 : f32
    %49 = vector.broadcast %cst_23 : f32 to vector<1x128xf32>
    %50 = arith.mulf %48, %49 : vector<1x128xf32>
    %51 = arith.mulf %47, %47 : vector<1x128xf32>
    %52 = arith.subf %50, %51 : vector<1x128xf32>
    %cst_24 = arith.constant 0.000000e+00 : f32
    %53 = vector.broadcast %cst_24 : f32 to vector<1x128xf32>
    %54 = arith.maximumf %52, %53 : vector<1x128xf32>
    %c0_25 = arith.constant 0 : index
    %c0_26 = arith.constant 0 : index
    %55 = vector.load %arg1[%c0_25, %c0_26] : memref<4x128xf32, #tpu.memory_space<vmem>>, vector<1x128xf32>
    %c1 = arith.constant 1 : index
    %c0_27 = arith.constant 0 : index
    %56 = vector.load %arg1[%c1, %c0_27] : memref<4x128xf32, #tpu.memory_space<vmem>>, vector<1x128xf32>
    %cst_28 = arith.constant 9.99999974E-6 : f32
    %57 = vector.broadcast %cst_28 : f32 to vector<1x128xf32>
    %58 = arith.addf %54, %57 : vector<1x128xf32>
    %59 = math.rsqrt %58 : vector<1x128xf32>
    %60 = arith.mulf %55, %59 : vector<1x128xf32>
    %61 = vector.broadcast %60 : vector<1x128xf32> to vector<32x128xf32>
    %62 = arith.mulf %38, %61 : vector<32x128xf32>
    %63 = arith.mulf %47, %60 : vector<1x128xf32>
    %64 = arith.subf %56, %63 : vector<1x128xf32>
    %65 = vector.broadcast %64 : vector<1x128xf32> to vector<32x128xf32>
    %66 = arith.addf %62, %65 : vector<32x128xf32>
    %cst_29 = arith.constant 0.000000e+00 : f32
    %67 = vector.broadcast %cst_29 : f32 to vector<32x128xf32>
    %68 = arith.maximumf %66, %67 : vector<32x128xf32>
    %c120_i32 = arith.constant 120 : i32
    %69 = tpu.dynamic_rotate %68 by %c120_i32 dim 1 : vector<32x128xf32>, i32 -> vector<32x128xf32>
    %70 = arith.maximumf %68, %69 : vector<32x128xf32>
    %c31_i32_30 = arith.constant 31 : i32
    %71 = tpu.dynamic_rotate %70 by %c31_i32_30 dim 0 : vector<32x128xf32>, i32 -> vector<32x128xf32>
    %72 = arith.maximumf %70, %71 : vector<32x128xf32>
    %c0_31 = arith.constant 0 : index
    %c0_32 = arith.constant 0 : index
    %73 = vector.load %arg6[%c0_31, %c0_32] : memref<128x64xf32, #tpu.memory_space<vmem>>, vector<128x64xf32>
    %cst_33 = arith.constant dense<0.000000e+00> : vector<32x64xf32>
    %74 = tpu.matmul %72, %73, %cst_33 {dimension_numbers = #tpu.dot_dimension_numbers<[1], [0], [0], [1], [0, 0, 1, 1], [], []>} : vector<32x128xf32>, vector<128x64xf32>, vector<32x64xf32> -> vector<32x64xf32>
    %c0_34 = arith.constant 0 : index
    %c0_35 = arith.constant 0 : index
    %75 = vector.load %arg7[%c0_34, %c0_35] : memref<16x32xf32, #tpu.memory_space<vmem>>, vector<16x32xf32>
    %cst_36 = arith.constant dense<0.000000e+00> : vector<16x64xf32>
    %76 = tpu.matmul %75, %74, %cst_36 {dimension_numbers = #tpu.dot_dimension_numbers<[1], [0], [0], [1], [0, 0, 1, 1], [], []>} : vector<16x32xf32>, vector<32x64xf32>, vector<16x64xf32> -> vector<16x64xf32>
    %77 = tpu.iota {dimensions = array<i32: 0>} : vector<16x64xi32>
    %c8_i32 = arith.constant 8 : i32
    %c0_i32_37 = arith.constant 0 : i32
    %78 = arith.cmpi eq, %c8_i32, %c0_i32_37 : i32
    %c1_i32_38 = arith.constant 1 : i32
    %79 = arith.select %78, %c1_i32_38, %c8_i32 : i32
    %80 = vector.broadcast %79 : i32 to vector<16x64xi32>
    %81 = arith.remsi %77, %80 : vector<16x64xi32>
    %c0_i32_39 = arith.constant 0 : i32
    %82 = vector.broadcast %c0_i32_39 : i32 to vector<16x64xi32>
    %83 = arith.cmpi ne, %81, %82 : vector<16x64xi32>
    %c0_i32_40 = arith.constant 0 : i32
    %84 = vector.broadcast %c0_i32_40 : i32 to vector<16x64xi32>
    %85 = arith.cmpi slt, %81, %84 : vector<16x64xi32>
    %c0_i32_41 = arith.constant 0 : i32
    %86 = arith.cmpi slt, %79, %c0_i32_41 : i32
    %87 = vector.broadcast %86 : i1 to vector<16x64xi1>
    %88 = vector.broadcast %87 : vector<16x64xi1> to vector<16x64xi1>
    %89 = arith.xori %85, %88 : vector<16x64xi1>
    %90 = arith.andi %89, %83 : vector<16x64xi1>
    %91 = vector.broadcast %79 : i32 to vector<16x64xi32>
    %92 = arith.addi %81, %91 : vector<16x64xi32>
    %93 = arith.select %90, %92, %81 : vector<16x64xi1>, vector<16x64xi32>
    %c0_i32_42 = arith.constant 0 : i32
    %94 = vector.broadcast %c0_i32_42 : i32 to vector<16x64xi32>
    %95 = arith.cmpi eq, %93, %94 : vector<16x64xi32>
    %c1_i32_43 = arith.constant 1 : i32
    %96 = tpu.dynamic_rotate %76 by %c1_i32_43 dim 0 : vector<16x64xf32>, i32 -> vector<16x64xf32>
    %cst_44 = arith.constant 0.000000e+00 : f32
    %97 = vector.broadcast %cst_44 : f32 to vector<16x64xf32>
    %98 = arith.select %95, %97, %96 : vector<16x64xi1>, vector<16x64xf32>
    %c7_i32 = arith.constant 7 : i32
    %99 = vector.broadcast %c7_i32 : i32 to vector<16x64xi32>
    %100 = arith.cmpi eq, %93, %99 : vector<16x64xi32>
    %c15_i32_45 = arith.constant 15 : i32
    %101 = tpu.dynamic_rotate %76 by %c15_i32_45 dim 0 : vector<16x64xf32>, i32 -> vector<16x64xf32>
    %cst_46 = arith.constant 0.000000e+00 : f32
    %102 = vector.broadcast %cst_46 : f32 to vector<16x64xf32>
    %103 = arith.select %100, %102, %101 : vector<16x64xi1>, vector<16x64xf32>
    %104 = arith.truncf %98 : vector<16x64xf32> to vector<16x64xbf16>
    %c0_47 = arith.constant 0 : index
    %c0_48 = arith.constant 0 : index
    %105 = vector.load %arg8[%c0_47, %c0_48] : memref<64x64xbf16, #tpu.memory_space<vmem>>, vector<64x64xbf16>
    %cst_49 = arith.constant dense<0.000000e+00> : vector<16x64xf32>
    %106 = tpu.matmul %104, %105, %cst_49 {dimension_numbers = #tpu.dot_dimension_numbers<[1], [0], [0], [1], [0, 0, 1, 1], [], []>} : vector<16x64xbf16>, vector<64x64xbf16>, vector<16x64xf32> -> vector<16x64xf32>
    %107 = arith.truncf %76 : vector<16x64xf32> to vector<16x64xbf16>
    %c0_50 = arith.constant 0 : index
    %c0_51 = arith.constant 0 : index
    %108 = vector.load %arg9[%c0_50, %c0_51] : memref<64x64xbf16, #tpu.memory_space<vmem>>, vector<64x64xbf16>
    %cst_52 = arith.constant dense<0.000000e+00> : vector<16x64xf32>
    %109 = tpu.matmul %107, %108, %cst_52 {dimension_numbers = #tpu.dot_dimension_numbers<[1], [0], [0], [1], [0, 0, 1, 1], [], []>} : vector<16x64xbf16>, vector<64x64xbf16>, vector<16x64xf32> -> vector<16x64xf32>
    %110 = arith.addf %106, %109 : vector<16x64xf32>
    %111 = arith.truncf %103 : vector<16x64xf32> to vector<16x64xbf16>
    %c0_53 = arith.constant 0 : index
    %c0_54 = arith.constant 0 : index
    %112 = vector.load %arg10[%c0_53, %c0_54] : memref<64x64xbf16, #tpu.memory_space<vmem>>, vector<64x64xbf16>
    %cst_55 = arith.constant dense<0.000000e+00> : vector<16x64xf32>
    %113 = tpu.matmul %111, %112, %cst_55 {dimension_numbers = #tpu.dot_dimension_numbers<[1], [0], [0], [1], [0, 0, 1, 1], [], []>} : vector<16x64xbf16>, vector<64x64xbf16>, vector<16x64xf32> -> vector<16x64xf32>
    %114 = arith.addf %110, %113 : vector<16x64xf32>
    %c2 = arith.constant 2 : index
    %c0_56 = arith.constant 0 : index
    %115 = vector.load %arg1[%c2, %c0_56] : memref<4x128xf32, #tpu.memory_space<vmem>>, vector<1x64xf32>
    %116 = vector.broadcast %115 : vector<1x64xf32> to vector<16x64xf32>
    %117 = arith.addf %114, %116 : vector<16x64xf32>
    %cst_57 = arith.constant 0.000000e+00 : f32
    %118 = vector.broadcast %cst_57 : f32 to vector<16x64xf32>
    %119 = arith.subf %118, %117 : vector<16x64xf32>
    %120 = math.exp %119 : vector<16x64xf32>
    %cst_58 = arith.constant 1.000000e+00 : f32
    %121 = vector.broadcast %cst_58 : f32 to vector<16x64xf32>
    %122 = arith.addf %121, %120 : vector<16x64xf32>
    %123 = tpu.reciprocal %122 {approx = true} : vector<16x64xf32> -> vector<16x64xf32>
    %124 = arith.truncf %123 : vector<16x64xf32> to vector<16x64xbf16>
    %c0_59 = arith.constant 0 : index
    %c0_60 = arith.constant 0 : index
    %125 = vector.load %arg11[%c0_59, %c0_60] : memref<64x128xbf16, #tpu.memory_space<vmem>>, vector<64x128xbf16>
    %cst_61 = arith.constant dense<0.000000e+00> : vector<16x128xf32>
    %126 = tpu.matmul %124, %125, %cst_61 {dimension_numbers = #tpu.dot_dimension_numbers<[1], [0], [0], [1], [0, 0, 1, 1], [], []>} : vector<16x64xbf16>, vector<64x128xbf16>, vector<16x128xf32> -> vector<16x128xf32>
    %c3 = arith.constant 3 : index
    %c0_62 = arith.constant 0 : index
    %127 = vector.load %arg1[%c3, %c0_62] : memref<4x128xf32, #tpu.memory_space<vmem>>, vector<1x128xf32>
    %128 = vector.broadcast %127 : vector<1x128xf32> to vector<16x128xf32>
    %129 = arith.addf %126, %128 : vector<16x128xf32>
    %c0_63 = arith.constant 0 : index
    %c0_64 = arith.constant 0 : index
    %130 = vector.load %arg12[%c0_63, %c0_64] : memref<16x128xf32, #tpu.memory_space<vmem>>, vector<16x128xf32>
    tpu.vector_store %arg12[%c0_63, %c0_64], %129 {strides = array<i32>} : memref<16x128xf32, #tpu.memory_space<vmem>>, vector<16x128xf32>,
    return
  }
}

</mosaic_0001>

<bundles_post_ra>
// kernel: _lambda_.1
= control target key start
LH: loop header
LB: loop body
LE: loop exit
PB: predicated region body
PF: predicated region fallthrough
CT: control target
= control target key end

     0   :  { %v46_v0 = vlaneseq  ;;  %v1688_v2 = vmov 0.0|0.0   ;;  %vm177_vm0 = vcmask 523264   ;;  %vm1689_vm7 = vmmov 0   ;;  %s1691_s15 = smov 120   ;;  %s2155_s3 = inlined_call_operand.vmem [shape: bf16[64,128], index: 3, kind: input, shape index: {}]   ;;  %s2156_s0 = inlined_call_operand.vmem [shape: f32[32,64], index: 0, kind: input, shape index: {}]   ;;  %s2157_s2 = inlined_call_operand.vmem [shape: bf16[64,128], index: 2, kind: input, shape index: {}]   ;;  %s2158_s4 = inlined_call_operand.vmem [shape: bf16[64,128], index: 4, kind: input, shape index: {}]   ;;  %s2159_s5 = inlined_call_operand.vmem [shape: f32[128,128], index: 5, kind: input, shape index: {}]   ;;  %s2160_s6 = inlined_call_operand.vmem [shape: f32[128,64], index: 6, kind: input, shape index: {}]   ;;  %s2161_s1 = inlined_call_operand.vmem [shape: f32[4,128], index: 1, kind: input, shape index: {}]   ;;  %s2162_s7 = inlined_call_operand.vmem [shape: f32[16,32], index: 7, kind: input, shape index: {}]   ;;  %s2163_s9 = inlined_call_operand.vmem [shape: bf16[64,64], index: 9, kind: input, shape index: {}]   ;;  %s2164_s8 = inlined_call_operand.vmem [shape: bf16[64,64], index: 8, kind: input, shape index: {}]   ;;  %s2165_s10 = inlined_call_operand.vmem [shape: bf16[64,64], index: 10, kind: input, shape index: {}]   ;;  %s2166_s11 = inlined_call_operand.vmem [shape: bf16[64,128], index: 11, kind: input, shape index: {}]   ;;  %s2167_s12 = inlined_call_operand.vmem [shape: f32[16,128], index: 12, kind: output, shape index: {}]  }
   0x1   :  { %v1650_v1 = vld [vmem:[%s2155_s3] sm:$0xff]   ;;  %1545 = vmatprep.subr.bf16.mxu1 %v1688_v2  ;;  %v1651_v3 = vld [vmem:[%s2155_s3 + $0x8] sm:$0xff]   ;;  %v1652_v5 = vld [vmem:[%s2155_s3 + $0x10] sm:$0xff]   ;;  %vm742_vm8 = vcmask 261120  }
   0x2   :  { %v1764_v4 = vshrl.u32 %v46_v0, 7  ;;  %1342 = vmatprep.subr.bf16.mxu0 %v1650_v1  ;;  %v1772_v6 = vld [vmem:[%s2156_s0] sm:$0xff]  ;;  %v1777_v7 = vld [vmem:[%s2156_s0 + $0x8] sm:$0xff]  ;;  %v1786_v11 = vld [vmem:[%s2156_s0 + $0x18] sm:$0xff] }
   0x3   :  { %1343 = vmatpush3.bf16.msra.mxu0 %v1650_v1  ;;  %v103_v8 = vrot.slane %v1772_v6, 7  ;;  %v143_v10 = vpack.c.bf16 %v1777_v7, %v1772_v6  ;;  %v106_v12 = vrot.slane %v1786_v11, 7  ;;  %v1653_v13 = vld [vmem:[%s2155_s3 + $0x18] sm:$0xff]   ;;  %v104_v14 = vrot.slane %v1777_v7, 7  ;;  %v1800_v16 = vld [vmem:[%s2156_s0 + $0x10] sm:$0xff]  ;;  %v1654_v17 = vld [vmem:[%s2157_s2] sm:$0xff]  }
   0x4   :  { %1344 = vmatprep.subr.bf16.mxu0 %v1651_v3  ;;  %v55_v9 = vand.u32 15, %v1764_v4  ;;  %vm107_vm1 = vcmp.lt.s32.totalorder %v1764_v4, 1  ;;  %v144_v20 = vpack.c.bf16 %v1786_v11, %v1800_v16  ;;  %v405_v21 = vld [vmem:[%s2159_s5] sm:$0xff]  ;;  %v406_v23 = vld [vmem:[%s2159_s5 + $0x8] sm:$0xff]  ;;  %v407_v24 = vld [vmem:[%s2159_s5 + $0x10] sm:$0xff]  ;;  %v49_v27 = vadd.s32 16, %v1764_v4 }
   0x5   :  { %1350 = vmatprep.mubr.msk.bf16.mxu0 %vm177_vm0, %v143_v10  ;;  %v111_v15 = vsel %vm107_vm1, %v106_v12, %v103_v8  ;;  %v110_v18 = vsel %vm107_vm1, %v103_v8, %v104_v14  ;;  %v408_v25 = vld [vmem:[%s2159_s5 + $0x18] sm:$0xff]  ;;  %v1655_v26 = vld [vmem:[%s2157_s2 + $0x8] sm:$0xff]   ;;  %v1825_v28 = vpack.c.bf16 %v406_v23, %v405_v21  ;;  %v1828_v29 = vadd.s32 8, %v1764_v4  ;;  %v409_v31 = vld [vmem:[%s2159_s5 + $0x20] sm:$0xff] }
   0x6   :  { %vm99_vm2 = vcmp.eq.s32.totalorder %v55_v9, 0  ;;  %v1832_v30 = vpack.c.bf16 %v408_v25, %v407_v24  ;;  %v410_v32 = vld [vmem:[%s2159_s5 + $0x28] sm:$0xff]  ;;  %v105_v33 = vrot.slane %v1800_v16, 7  ;;  %v1656_v34 = vld [vmem:[%s2157_s2 + $0x10] sm:$0xff]   ;;  %v69_v35 = vand.u32 15, %v49_v27  ;;  %v1657_v41 = vld [vmem:[%s2157_s2 + $0x18] sm:$0xff]  }
   0x7   :  { %1345 = vmatpush3.bf16.msra.mxu0 %v1651_v3  ;;  %v112_v19 = vsel %vm99_vm2, 0.0, %v111_v15  ;;  %1547 = vmatpush3.bf16.msra.mxu1 %v1825_v28  ;;  %v121_v36 = vrot.slane %v1777_v7, 1  ;;  %v122_v37 = vrot.slane %v1800_v16, 1  ;;  %v62_v38 = vand.u32 15, %v1828_v29  ;;  %v1658_v46 = vld [vmem:[%s2158_s4] sm:$0xff]   ;;  %v1659_v51 = vld [vmem:[%s2158_s4 + $0x8] sm:$0xff]  }
   0x8   :  { %1346 = vmatprep.subr.bf16.mxu0 %v1652_v5  ;;  %v133_v22 = vpack.c.bf16 %v110_v18, %v112_v19  ;;  %1548 = vmatprep.subr.bf16.mxu1 %v1688_v2  ;;  %vm124_vm3 = vcmp.lt.s32.totalorder %v1764_v4, 7  ;;  %v1851_v39 = vpack.c.bf16 %v410_v32, %v409_v31  ;;  %v120_v40 = vrot.slane %v1772_v6, 1  ;;  %v1660_v54 = vld [vmem:[%s2158_s4 + $0x10] sm:$0xff]   ;;  %v1661_v56 = vld [vmem:[%s2158_s4 + $0x18] sm:$0xff]   ;;  %v413_v0 = vld [vmem:[%s2159_s5 + $0x40] sm:$0xff] }
   0x9   :  { %vm101_vm4 = vcmp.eq.s32.totalorder %v69_v35, 0  ;;  %v109_v42 = vsel %vm107_vm1, %v104_v14, %v105_v33  ;;  %vm117_vm5 = vcmp.eq.s32.totalorder %v62_v38, 15  ;;  %v126_v43 = vsel %vm124_vm3, %v121_v36, %v122_v37  ;;  %v411_v61 = vld [vmem:[%s2159_s5 + $0x30] sm:$0xff]  ;;  %v412_v62 = vld [vmem:[%s2159_s5 + $0x38] sm:$0xff]  ;;  %v414_v1 = vld [vmem:[%s2159_s5 + $0x48] sm:$0xff] }
   0xa   :  { %v108_v44 = vsel %vm107_vm1, %v105_v33, %v106_v12  ;;  %v114_v45 = vsel %vm101_vm4, 0.0, %v109_v42  ;;  %v127_v47 = vsel %vm124_vm3, %v120_v40, %v121_v36  ;;  %v130_v48 = vsel %vm117_vm5, 0.0, %v126_v43  ;;  %v416_v6 = vld [vmem:[%s2159_s5 + $0x58] sm:$0xff]  ;;  %v417_v8 = vld [vmem:[%s2159_s5 + $0x60] sm:$0xff]  ;;  %v418_v9 = vld [vmem:[%s2159_s5 + $0x68] sm:$0xff] }
   0xb   :  { %1347 = vmatpush3.bf16.msra.mxu0 %v1652_v5  ;;  %1550 = vmatpush3.bf16.msra.mxu1 %v1832_v30  ;;  %v134_v49 = vpack.c.bf16 %v108_v44, %v114_v45  ;;  %v312_v50 = vpack.c.bf16 %v130_v48, %v127_v47  ;;  %v50_v52 = vadd.s32 24, %v1764_v4  ;;  %v123_v53 = vrot.slane %v1786_v11, 1  ;;  %v415_v5 = vld [vmem:[%s2159_s5 + $0x50] sm:$0xff]  ;;  %v420_v12 = vld [vmem:[%s2159_s5 + $0x78] sm:$0xff]  ;;  %v639_v42 = vld [vmem:[%s2160_s6] sm:$0xff] }
   0xc   :  { %1348 = vmatprep.subr.bf16.mxu0 %v1653_v13  ;;  %1551 = vmatprep.subr.bf16.mxu1 %v1688_v2  ;;  %v1555_v63 = vpack.c.bf16 %v412_v62, %v411_v61  ;;  %v1558_v3 = vpack.c.bf16 %v414_v1, %v413_v0  ;;  %v1561_v7 = vpack.c.bf16 %v416_v6, %v415_v5  ;;  %v419_v11 = vld [vmem:[%s2159_s5 + $0x70] sm:$0xff]  ;;  %v640_v43 = vld [vmem:[%s2160_s6 + $0x8] sm:$0xff]  ;;  %v643_v47 = vld [vmem:[%s2160_s6 + $0x20] sm:$0xff]  ;;  %v595_v5 = vsub.s32 0, %v1764_v4 }
   0xd   :  { %v76_v55 = vand.u32 15, %v50_v52  ;;  %v128_v57 = vsel %vm124_vm3, %v123_v53, %v120_v40  ;;  %v125_v58 = vsel %vm124_vm3, %v122_v37, %v123_v53  ;;  %v1564_v10 = vpack.c.bf16 %v418_v9, %v417_v8  ;;  %v641_v44 = vld [vmem:[%s2160_s6 + $0x10] sm:$0xff]  ;;  %v644_v48 = vld [vmem:[%s2160_s6 + $0x28] sm:$0xff]  ;;  %v647_v53 = vld [vmem:[%s2160_s6 + $0x40] sm:$0xff] }
   0xe   :  { %v1567_v14 = vpack.c.bf16 %v420_v12, %v419_v11  ;;  %v1593_v45 = vpack.c.bf16 %v640_v43, %v639_v42  ;;  %v649_v6 = vld [vmem:[%s2160_s6 + $0x50] sm:$0xff]  ;;  %v589_v11 = vld [vmem:[%s2161_s1 + $0x1] sm:$0x1] }
   0xf   :  { %1349 = vmatpush3.bf16.msra.mxu0 %v1653_v13  ;;  %1553 = vmatpush3.bf16.msra.mxu1 %v1851_v39  ;;  %vm119_vm6 = vcmp.eq.s32.totalorder %v76_v55, 15  ;;  %v1690_v13 = vmov 0.0  }
  0x10   :  { %1354 = vmatprep.subr.bf16.mxu0 %v1654_v17  ;;  %1554 = vmatprep.subr.bf16.mxu1 %v1688_v2  ;;  %v132_v59 = vsel %vm119_vm6, 0.0, %v128_v57 }
  0x11   :  { %v313_v60 = vpack.c.bf16 %v132_v59, %v125_v58  ;;  %1410 = vmatprep.mubr.msk.f32.mxu1 %vm1689_vm7, %v1690_v13 }
  0x12   :  { %1351 = vmatmul.mubr.msk.bf16.vlgmr.msra.gmra.mrb[0].mxu0 %vm177_vm0, %v144_v20 }
  0x13   :  { %1355 = vmatpush3.bf16.msra.mxu0 %v1654_v17  ;;  %1362 = vmatprep.mubr.msk.bf16.mxu0 %vm177_vm0, %v133_v22 }
  0x14   :  { %1356 = vmatprep.subr.bf16.mxu0 %v1655_v26  ;;  %1556 = vmatpush3.bf16.msra.mxu1 %v1555_v63 }
  0x15   :  { %1557 = vmatprep.subr.bf16.mxu1 %v1688_v2 }
  0x17   :  { %1357 = vmatpush3.bf16.msra.mxu0 %v1655_v26 }
  0x18   :  { %1358 = vmatprep.subr.bf16.mxu0 %v1656_v34  ;;  %1559 = vmatpush3.bf16.msra.mxu1 %v1558_v3 }
  0x19   :  { %1560 = vmatprep.subr.bf16.mxu1 %v1688_v2 }
  0x1b   :  { %1359 = vmatpush3.bf16.msra.mxu0 %v1656_v34 }
  0x1c   :  { %1360 = vmatprep.subr.bf16.mxu0 %v1657_v41  ;;  %1562 = vmatpush3.bf16.msra.mxu1 %v1561_v7 }
  0x1d   :  { %1563 = vmatprep.subr.bf16.mxu1 %v1688_v2 }
  0x1f   :  { %1361 = vmatpush3.bf16.msra.mxu0 %v1657_v41 }
  0x20   :  { %1366 = vmatprep.subr.bf16.mxu0 %v1658_v46  ;;  %1565 = vmatpush3.bf16.msra.mxu1 %v1564_v10 }
  0x21   :  { %1566 = vmatprep.subr.bf16.mxu1 %v1688_v2 }
  0x22   :  { %1363 = vmatmul.mubr.msk.bf16.vlgmr.msra.gmra.mrb[0].mxu0 %vm177_vm0, %v134_v49  ;;  %v1601_v49 = vpack.c.bf16 %v644_v48, %v643_v47 }
  0x23   :  { %1367 = vmatpush3.bf16.msra.mxu0 %v1658_v46  ;;  %1374 = vmatprep.mubr.msk.bf16.mxu0 %vm177_vm0, %v312_v50  ;;  %v645_v50 = vld [vmem:[%s2160_s6 + $0x30] sm:$0xff] }
  0x24   :  { %1368 = vmatprep.subr.bf16.mxu0 %v1659_v51  ;;  %1568 = vmatpush3.bf16.msra.mxu1 %v1567_v14 }
  0x25   :  { %1569 = vmatprep.subr.bf16.mxu1 %v1688_v2 }
  0x27   :  { %1369 = vmatpush3.bf16.msra.mxu0 %v1659_v51  ;;  %v646_v51 = vld [vmem:[%s2160_s6 + $0x38] sm:$0xff] }
  0x28   :  { %1370 = vmatprep.subr.bf16.mxu0 %v1660_v54  ;;  %v1605_v52 = vpack.c.bf16 %v646_v51, %v645_v50 }
  0x2b   :  { %1371 = vmatpush3.bf16.msra.mxu0 %v1660_v54  ;;  %v648_v54 = vld [vmem:[%s2160_s6 + $0x48] sm:$0xff] }
  0x2c   :  { %1372 = vmatprep.subr.bf16.mxu0 %v1661_v56  ;;  %v1609_v55 = vpack.c.bf16 %v648_v54, %v647_v53 }
  0x2f   :  { %1373 = vmatpush3.bf16.msra.mxu0 %v1661_v56 }
  0x30   :  { %1594 = vmatprep.subr.bf16.mxu0 %v1593_v45 }
  0x32   :  { %1375 = vmatmul.mubr.msk.bf16.vlgmr.msra.gmra.mrb[0].mxu0 %vm177_vm0, %v313_v60 }
  0x33   :  { %1596 = vmatpush3.bf16.msra.mxu0 %v1593_v45 }
 0x105   :  { %v1926_v15 = vpop.f32.mrb[0].mxu0 }
 0x106   :  { %v1928_v16 = vpop.f32.mrb[1].mxu0  ;;  %v432_v22 = vmul.f32 %v1926_v15, %v1926_v15 }
 0x107   :  { %v1930_v17 = vpop.f32.mrb[2].mxu0  ;;  %v430_v19 = vmul.f32 %v1928_v16, %v1928_v16 }
 0x108   :  { %v1932_v18 = vpop.f32.mrb[3].mxu0  ;;  %v433_v25 = vmul.f32 %v1930_v17, %v1930_v17 }
 0x109   :  { %v421_v20 = vadd.f32 %v1932_v18, %v1928_v16  ;;  %v431_v21 = vmul.f32 %v1932_v18, %v1932_v18 }
 0x10b   :  { %v422_v23 = vadd.f32 %v1926_v15, %v421_v20  ;;  %v434_v24 = vadd.f32 %v431_v21, %v430_v19  ;;  %v651_v19 = vld [vmem:[%s2160_s6 + $0x60] sm:$0xff]  ;;  %v652_v20 = vld [vmem:[%s2160_s6 + $0x68] sm:$0xff] }
 0x10c   :  { %v1617_v21 = vpack.c.bf16 %v652_v20, %v651_v19 }
 0x10d   :  { %v423_v26 = vadd.f32 %v1930_v17, %v422_v23  ;;  %v435_v27 = vadd.f32 %v434_v24, %v432_v22 }
 0x10f   :  { %v424_v31 = vrot.slane %v423_v26, 4  ;;  %v436_v32 = vadd.f32 %v435_v27, %v433_v25 }
 0x111   :  { %v425_v33 = vadd.f32 %v424_v31, %v423_v26  ;;  %v437_v38 = vrot.slane %v436_v32, 4  ;;  %v653_v31 = vld [vmem:[%s2160_s6 + $0x70] sm:$0xff] }
 0x113   :  { %v426_v34 = vrot.slane %v425_v33, 2  ;;  %v438_v40 = vadd.f32 %v437_v38, %v436_v32  ;;  %v654_v32 = vld [vmem:[%s2160_s6 + $0x78] sm:$0xff] }
 0x115   :  { %v427_v35 = vadd.f32 %v426_v34, %v425_v33  ;;  %v1621_v33 = vpack.c.bf16 %v654_v32, %v653_v31 }
 0x117   :  { %v428_v36 = vrot.slane %v427_v35, 1 }
 0x119   :  { %v429_v37 = vadd.f32 %v428_v36, %v427_v35 }
 0x11b   :  { %1411 = vmatmul.mubr.f32.vlgmr.msra.gmra.mrb[0].mxu1 %v429_v37 }
 0x11c   :  { %1571 = vmatpush3.bf16.msra.mxu1 %v1825_v28  ;;  %1445 = vmatprep.mubr.msk.f32.mxu1 %vm1689_vm7, %v1690_v13  ;;  %v439_v28 = vrot.slane %v438_v40, 2 }
 0x11d   :  { %1572 = vmatprep.subr.bf16.mxu1 %v1688_v2 }
 0x11e   :  { %v440_v41 = vadd.f32 %v439_v28, %v438_v40 }
 0x120   :  { %1574 = vmatpush3.bf16.msra.mxu1 %v1832_v30  ;;  %v441_v30 = vrot.slane %v440_v41, 1 }
 0x121   :  { %1575 = vmatprep.subr.bf16.mxu1 %v1688_v2 }
 0x124   :  { %1577 = vmatpush3.bf16.msra.mxu1 %v1851_v39  ;;  %v442_v39 = vadd.f32 %v441_v30, %v440_v41 }
 0x125   :  { %1578 = vmatprep.subr.bf16.mxu1 %v1688_v2 }
 0x128   :  { %1580 = vmatpush3.bf16.msra.mxu1 %v1555_v63 }
 0x129   :  { %1581 = vmatprep.subr.bf16.mxu1 %v1688_v2 }
 0x12c   :  { %1583 = vmatpush3.bf16.msra.mxu1 %v1558_v3  ;;  %v588_v3 = vld [vmem:[%s2161_s1] sm:$0x1] }
 0x12d   :  { %1584 = vmatprep.subr.bf16.mxu1 %v1688_v2 }
 0x130   :  { %1586 = vmatpush3.bf16.msra.mxu1 %v1561_v7  ;;  %v650_v7 = vld [vmem:[%s2160_s6 + $0x58] sm:$0xff] }
 0x131   :  { %1587 = vmatprep.subr.bf16.mxu1 %v1688_v2  ;;  %v1613_v9 = vpack.c.bf16 %v650_v7, %v649_v6  ;;  %v1663_v6 = vld [vmem:[%s2163_s9 + $0x8] sm:$0xff]   ;;  %v1665_v7 = vld [vmem:[%s2163_s9 + $0x10] sm:$0xff]  }
 0x134   :  { %1589 = vmatpush3.bf16.msra.mxu1 %v1564_v10 }
 0x135   :  { %1590 = vmatprep.subr.bf16.mxu1 %v1688_v2  ;;  %v642_v2 = vld [vmem:[%s2160_s6 + $0x18] sm:$0xff] }
 0x136   :  { %v1597_v46 = vpack.c.bf16 %v642_v2, %v641_v44 }
 0x138   :  { %1592 = vmatpush3.bf16.msra.mxu1 %v1567_v14  ;;  %1598 = vmatprep.subr.bf16.mxu0 %v1597_v46 }
 0x139   :  { %1600 = vmatpush3.bf16.msra.mxu0 %v1597_v46 }
 0x13a   :  { %1602 = vmatprep.subr.bf16.mxu0 %v1601_v49 }
 0x13b   :  { %1446 = vmatmul.mubr.f32.vlgmr.msra.gmra.mrb[2].mxu1 %v442_v39 }
 0x13d   :  { %1604 = vmatpush3.bf16.msra.mxu0 %v1601_v49 }
 0x13e   :  { %1606 = vmatprep.subr.bf16.mxu0 %v1605_v52 }
 0x141   :  { %1608 = vmatpush3.bf16.msra.mxu0 %v1605_v52 }
 0x142   :  { %1610 = vmatprep.subr.bf16.mxu0 %v1609_v55 }
 0x145   :  { %1612 = vmatpush3.bf16.msra.mxu0 %v1609_v55 }
 0x146   :  { %1614 = vmatprep.subr.bf16.mxu0 %v1613_v9 }
 0x149   :  { %1616 = vmatpush3.bf16.msra.mxu0 %v1613_v9  ;;  %v1668_v9 = vld [vmem:[%s2164_s8 + $0x10] sm:$0xff]  }
 0x14a   :  { %1618 = vmatprep.subr.bf16.mxu0 %v1617_v21 }
 0x14d   :  { %1620 = vmatpush3.bf16.msra.mxu0 %v1617_v21 }
 0x14e   :  { %1622 = vmatprep.subr.bf16.mxu0 %v1621_v33 }
 0x151   :  { %1624 = vmatpush3.bf16.msra.mxu0 %v1621_v33 }
 0x152   :  { %1509 = vmatprep.subr.bf16.mxu0 %v1690_v13 }
 0x1ee   :  { %v509_v56 = vpop.f32.mrb[0].mxu1 }
 0x1ef   :  { %v1412_v57 = vpop.f32.mrb[1].mxu1  ;;  %v513_v58 = vmul.f32 0.001953125, %v509_v56 }
 0x1f0   :  { %v740_v57 = vld [vmem:[%s2162_s7] sm:$0xff] }
 0x1f1   :  { %v585_v60 = vmul.f32 %v513_v58, %v513_v58  ;;  %1494 = vmatprep.mubr.msk.f32.mxu1 %vm742_vm8, %v740_v57 }
 0x20e   :  { %v580_v59 = vpop.f32.mrb[2].mxu1 }
 0x20f   :  { %v584_v61 = vmul.f32 0.001953125, %v580_v59  ;;  %v1447_v62 = vpop.f32.mrb[3].mxu1  ;;  %v1666_v59 = vld [vmem:[%s2164_s8 + $0x8] sm:$0xff]  }
 0x211   :  { %v586_v63 = vsub.f32 %v584_v61, %v585_v60 }
 0x213   :  { %v587_v0 = vmax.f32 %v586_v63, 0.0 }
 0x215   :  { %v590_v1 = vadd.f32 1e-05, %v587_v0 }
 0x217   :  { %1678 = vrsqrt.f32 %v590_v1 }
 0x221   :  { %v1679_v8 = vpop.eup %1678 }
 0x222   :  { %v592_v10 = vmul.f32 %v1679_v8, %v588_v3  ;;  %v741_v3 = vld [vmem:[%s2162_s7 + $0x8] sm:$0xff]  ;;  %v1667_v8 = vld [vmem:[%s2163_s9 + $0x18] sm:$0xff]  }
 0x224   :  { %v596_v12 = vrot.slane %v592_v10, %v595_v5  ;;  %v601_v14 = vmul.f32 %v592_v10, %v513_v58  ;;  %v1664_v58 = vld [vmem:[%s2164_s8] sm:$0xff]   ;;  %v1670_v10 = vld [vmem:[%s2164_s8 + $0x18] sm:$0xff]  }
 0x226   :  { %v600_v22 = vmul.f32 %v1930_v17, %v596_v12  ;;  %v602_v23 = vsub.f32 %v589_v11, %v601_v14  ;;  %v597_v24 = vmul.f32 %v596_v12, %v1928_v16  ;;  %v598_v25 = vmul.f32 %v596_v12, %v1932_v18 }
 0x227   :  { %v599_v26 = vmul.f32 %v1926_v15, %v596_v12  ;;  %v828_v11 = vand.u32 7, %v1764_v4  ;;  %v835_v12 = vand.u32 7, %v1828_v29  ;;  %v1669_v29 = vld [vmem:[%s2165_s10] sm:$0xff]   ;;  %v1671_v4 = vld [vmem:[%s2165_s10 + $0x8] sm:$0xff]  }
 0x228   :  { %v606_v27 = vrot.slane %v602_v23, %v595_v5  ;;  %v1662_v5 = vld [vmem:[%s2163_s9] sm:$0xff]  }
 0x229   :  { %vm2073_vm9 = vcmp.eq.s32.totalorder %v828_v11, 0  ;;  %vm2077_vm10 = vcmp.eq.s32.totalorder %v835_v12, 0  ;;  %vm2081_vm11 = vcmp.eq.s32.totalorder %v828_v11, 7  ;;  %vm2088_vm12 = vcmp.eq.s32.totalorder %v835_v12, 7 }
 0x22a   :  { %v610_v17 = vadd.f32 %v606_v27, %v600_v22  ;;  %v607_v34 = vadd.f32 %v606_v27, %v597_v24  ;;  %v608_v35 = vadd.f32 %v606_v27, %v598_v25  ;;  %v609_v16 = vadd.f32 %v606_v27, %v599_v26 }
 0x22c   :  { %v614_v18 = vmax.f32 %v610_v17, 0.0  ;;  %v611_v36 = vmax.f32 %v607_v34, 0.0  ;;  %v612_v15 = vmax.f32 %v608_v35, 0.0  ;;  %v613_v38 = vmax.f32 %v609_v16, 0.0 }
 0x22e   :  { %621 = vrot.lane.b32.xlu1 %v614_v18, %s1691_s15  ;;  %v1645_v37 = vpack.i.bf16 %v612_v15, %v611_v36 }
 0x230   :  { %1646 = vrot.lane.b32.xlu0 %v1645_v37, %s1691_s15 }
 0x234   :  { %619 = vrot.lane.b32.xlu0 %v613_v38, %s1691_s15 }
 0x2a0   :  { %v622_v40 = vpop.permute.xlu1 %621 }
 0x2a1   :  { %v626_v39 = vmax.f32 %v614_v18, %v622_v40  ;;  %v1673_v40 = vld [vmem:[%s2165_s10 + $0x18] sm:$0xff]  }
 0x2a2   :  { %v1647_v28 = vpop.permute.xlu0 %1646 }
 0x2a3   :  { %v1649_v41 = vunpack.i.h.bf16 %v1647_v28  ;;  %v1648_v30 = vunpack.i.l.bf16 %v1647_v28  ;;  %v630_v47 = vrot.slane %v626_v39, 1  ;;  %v1674_v28 = vld [vmem:[%s2166_s11] sm:$0xff]  }
 0x2a5   :  { %v624_v42 = vmax.f32 %v612_v15, %v1649_v41  ;;  %v623_v43 = vmax.f32 %v611_v36, %v1648_v30  ;;  %v1675_v41 = vld [vmem:[%s2166_s11 + $0x8] sm:$0xff]   ;;  %v1676_v30 = vld [vmem:[%s2166_s11 + $0x10] sm:$0xff]  }
 0x2a6   :  { %v620_v44 = vpop.permute.xlu0 %619 }
 0x2a7   :  { %v628_v45 = vrot.slane %v624_v42, 1  ;;  %v627_v2 = vrot.slane %v623_v43, 1  ;;  %v625_v46 = vmax.f32 %v613_v38, %v620_v44  ;;  %v1672_v38 = vld [vmem:[%s2165_s10 + $0x10] sm:$0xff]  }
 0x2a9   :  { %v629_v48 = vrot.slane %v625_v46, 1  ;;  %v633_v49 = vsel %vm124_vm3, %v627_v2, %v628_v45  ;;  %v634_v55 = vsel %vm124_vm3, %v630_v47, %v627_v2 }
 0x2aa   :  { %v635_v50 = vmax.f32 %v623_v43, %v633_v49  ;;  %v638_v56 = vmax.f32 %v626_v39, %v634_v55  ;;  %v1677_v39 = vld [vmem:[%s2166_s11 + $0x18] sm:$0xff]  }
 0x2ab   :  { %v631_v51 = vsel %vm124_vm3, %v629_v48, %v630_v47  ;;  %v632_v52 = vsel %vm124_vm3, %v628_v45, %v629_v48 }
 0x2ac   :  { %v637_v53 = vmax.f32 %v625_v46, %v631_v51  ;;  %1480 = vmatprep.mubr.f32.mxu0 %v635_v50  ;;  %v636_v54 = vmax.f32 %v624_v42, %v632_v52  ;;  %v1237_v52 = vld [vmem:[%s2161_s1 + $0x2] ss:$0 sm:$0xff] }
 0x2ae   :  { %1481 = vmatmul.mubr.f32.vlgmr.msra.gmra.mrb[4].mxu0 %v636_v54 }
 0x2af   :  { %1483 = vmatprep.mubr.f32.mxu0 %v637_v53  ;;  %1510 = vmatpush3.bf16.msra.mxu0 %v1664_v58 }
 0x2b0   :  { %1511 = vmatprep.subr.bf16.mxu0 %v1690_v13 }
 0x2b2   :  { %1484 = vmatmul.mubr.f32.gmra.mrb[6].mxu0 %v638_v56 }
 0x2b3   :  { %1517 = vmatprep.mubr.msk.bf16.mxu0 %vm1689_vm7, %v1690_v13  ;;  %1512 = vmatpush3.bf16.msra.mxu0 %v1666_v59 }
 0x2b4   :  { %1513 = vmatprep.subr.bf16.mxu0 %v1690_v13 }
 0x2b7   :  { %1514 = vmatpush3.bf16.msra.mxu0 %v1668_v9 }
 0x2b8   :  { %1515 = vmatprep.subr.bf16.mxu0 %v1690_v13 }
 0x2bb   :  { %1516 = vmatpush3.bf16.msra.mxu0 %v1670_v10 }
 0x2bc   :  { %1533 = vmatprep.subr.bf16.mxu0 %v1690_v13 }
 0x381   :  { %v1482_v60 = vpop.f32.mrb[4].mxu0 }
 0x382   :  { %v721_v61 = vpop.f32.mrb[5].mxu0 }
 0x383   :  { %v1625_v62 = vpack.c.bf16 %v1482_v60, %v721_v61 }
 0x385   :  { %v1485_v63 = vpop.f32.mrb[6].mxu0  ;;  %1626 = vmatprep.subr.bf16.mxu1 %v1625_v62 }
 0x386   :  { %v731_v0 = vpop.f32.mrb[7].mxu0  ;;  %1628 = vmatpush3.bf16.msra.mxu1 %v1625_v62 }
 0x387   :  { %v1629_v1 = vpack.c.bf16 %v1485_v63, %v731_v0 }
 0x389   :  { %1630 = vmatprep.subr.bf16.mxu1 %v1629_v1 }
 0x38a   :  { %1632 = vmatpush3.bf16.msra.mxu1 %v1629_v1 }
 0x38b   :  { %1497 = vmatprep.subr.bf16.mxu1 %v1690_v13 }
 0x38d   :  { %1495 = vmatmul.mubr.msk.f32.vlgmr.msra.gmra.mrb[4].mxu1 %vm742_vm8, %v741_v3 }
 0x38e   :  { %1498 = vmatpush3.bf16.msra.mxu1 %v1662_v5  ;;  %1505 = vmatprep.mubr.msk.bf16.mxu1 %vm1689_vm7, %v1690_v13 }
 0x38f   :  { %1499 = vmatprep.subr.bf16.mxu1 %v1690_v13 }
 0x392   :  { %1500 = vmatpush3.bf16.msra.mxu1 %v1663_v6 }
 0x393   :  { %1501 = vmatprep.subr.bf16.mxu1 %v1690_v13 }
 0x396   :  { %1502 = vmatpush3.bf16.msra.mxu1 %v1665_v7 }
 0x397   :  { %1503 = vmatprep.subr.bf16.mxu1 %v1690_v13 }
 0x39a   :  { %1504 = vmatpush3.bf16.msra.mxu1 %v1667_v8  ;;  %v1238_v8 = vld [vmem:[%s2161_s1 + $0x3] ss:$0 sm:$0xff] }
 0x39b   :  { %1521 = vmatprep.subr.bf16.mxu1 %v1690_v13 }
 0x460   :  { %v1496_v14 = vpop.f32.mrb[4].mxu1 }
 0x461   :  { %v851_v20 = vrot.slane %v1496_v14, 7  ;;  %v859_v21 = vrot.slane %v1496_v14, 1  ;;  %v815_v22 = vpop.f32.mrb[5].mxu1 }
 0x462   :  { %v850_v25 = vrot.slane %v815_v22, 7  ;;  %v858_v27 = vrot.slane %v815_v22, 1  ;;  %v873_v31 = vpack.c.bf16 %v1496_v14, %v815_v22 }
 0x464   :  { %v852_v32 = vsel %vm107_vm1, %v850_v25, %v851_v20  ;;  %v853_v33 = vsel %vm107_vm1, %v851_v20, %v850_v25  ;;  %v860_v17 = vsel %vm124_vm3, %v858_v27, %v859_v21  ;;  %v861_v34 = vsel %vm124_vm3, %v859_v21, %v858_v27  ;;  %1506 = vmatmul.mubr.msk.bf16.vlgmr.msra.gmra.mrb[8].mxu1 %vm177_vm0, %v873_v31 }
 0x465   :  { %v854_v35 = vsel %vm2073_vm9, 0.0, %v853_v33  ;;  %v855_v16 = vsel %vm2077_vm10, 0.0, %v852_v32  ;;  %v862_v18 = vsel %vm2081_vm11, 0.0, %v860_v17  ;;  %v863_v36 = vsel %vm2088_vm12, 0.0, %v861_v34  ;;  %1522 = vmatpush3.bf16.msra.mxu1 %v1669_v29  ;;  %1529 = vmatprep.mubr.msk.bf16.mxu1 %vm1689_vm7, %v1690_v13 }
 0x466   :  { %v864_v15 = vpack.c.bf16 %v855_v16, %v854_v35  ;;  %v1018_v37 = vpack.c.bf16 %v863_v36, %v862_v18  ;;  %1523 = vmatprep.subr.bf16.mxu1 %v1690_v13 }
 0x468   :  { %1518 = vmatmul.mubr.msk.bf16.vlgmr.msra.gmra.mrb[8].mxu0 %vm177_vm0, %v864_v15 }
 0x469   :  { %1524 = vmatpush3.bf16.msra.mxu1 %v1671_v4  ;;  %1541 = vmatprep.mubr.msk.bf16.mxu0 %vm1689_vm7, %v1690_v13 }
 0x46a   :  { %1525 = vmatprep.subr.bf16.mxu1 %v1690_v13  ;;  %1534 = vmatpush3.bf16.msra.mxu0 %v1674_v28 }
 0x46b   :  { %1535 = vmatprep.subr.bf16.mxu0 %v1690_v13 }
 0x46d   :  { %1526 = vmatpush3.bf16.msra.mxu1 %v1672_v38 }
 0x46e   :  { %1527 = vmatprep.subr.bf16.mxu1 %v1690_v13  ;;  %1536 = vmatpush3.bf16.msra.mxu0 %v1675_v41 }
 0x46f   :  { %1537 = vmatprep.subr.bf16.mxu0 %v1690_v13 }
 0x471   :  { %1528 = vmatpush3.bf16.msra.mxu1 %v1673_v40 }
 0x472   :  { %1538 = vmatpush3.bf16.msra.mxu0 %v1676_v30 }
 0x473   :  { %1539 = vmatprep.subr.bf16.mxu0 %v1690_v13 }
 0x474   :  { %1530 = vmatmul.mubr.msk.bf16.vlgmr.msra.gmra.mrb[12].mxu1 %vm177_vm0, %v1018_v37 }
 0x476   :  { %1540 = vmatpush3.bf16.msra.mxu0 %v1677_v39 }
 0x537   :  { %v943_v42 = vpop.f32.mrb[8].mxu1 }
 0x538   :  { %v1507_v43 = vpop.f32.mrb[9].mxu1 }
 0x539   :  { %v946_v44 = vpop.f32.mrb[10].mxu1 }
 0x53a   :  { %v1508_v45 = vpop.f32.mrb[11].mxu1 }
 0x53b   :  { %v1011_v2 = vpop.f32.mrb[8].mxu0 }
 0x53c   :  { %v1012_v46 = vadd.f32 %v1011_v2, %v943_v42  ;;  %v1519_v47 = vpop.f32.mrb[9].mxu0 }
 0x53d   :  { %v1014_v48 = vpop.f32.mrb[10].mxu0 }
 0x53e   :  { %v1015_v49 = vadd.f32 %v1014_v48, %v946_v44  ;;  %v1520_v50 = vpop.f32.mrb[11].mxu0 }
 0x547   :  { %v1088_v51 = vpop.f32.mrb[12].mxu1 }
 0x548   :  { %v1095_v53 = vadd.f32 %v1088_v51, %v1012_v46  ;;  %v1531_v54 = vpop.f32.mrb[13].mxu1 }
 0x549   :  { %v1091_v55 = vpop.f32.mrb[14].mxu1 }
 0x54a   :  { %v1102_v13 = vadd.f32 %v1237_v52, %v1095_v53  ;;  %v1096_v56 = vadd.f32 %v1091_v55, %v1015_v49  ;;  %v1532_v57 = vpop.f32.mrb[15].mxu1 }
 0x54c   :  { %v1104_v58 = vsub.f32 0.0, %v1102_v13  ;;  %v1103_v59 = vadd.f32 %v1237_v52, %v1096_v56 }
 0x54e   :  { %v1106_v60 = vmul.f32 1.442695, %v1104_v58  ;;  %v1105_v61 = vsub.f32 0.0, %v1103_v59 }
 0x550   :  { %1680 = vpow2.f32 %v1106_v60  ;;  %v1108_v62 = vmul.f32 1.442695, %v1105_v61 }
 0x552   :  { %1682 = vpow2.f32 %v1108_v62 }
 0x55a   :  { %v1681_v63 = vpop.eup %1680 }
 0x55b   :  { %v1110_v0 = vadd.f32 1.0, %v1681_v63 }
 0x55c   :  { %v1683_v1 = vpop.eup %1682 }
 0x55d   :  { %v1111_v3 = vadd.f32 1.0, %v1683_v1  ;;  %1684 = vrcp.f32 %v1110_v0 }
 0x55f   :  { %1686 = vrcp.f32 %v1111_v3 }
 0x567   :  { %v1685_v5 = vpop.eup %1684 }
 0x569   :  { %v1687_v6 = vpop.eup %1686 }
 0x56a   :  { %v1114_v7 = vpack.c.bf16 %v1687_v6, %v1685_v5 }
 0x56c   :  { %1542 = vmatmul.mubr.msk.bf16.vlgmr.msra.gmra.mrb[12].mxu0 %vm177_vm0, %v1114_v7 }
 0x63f   :  { %v1189_v9 = vpop.f32.mrb[12].mxu0 }
 0x640   :  { %v1190_v10 = vadd.f32 %v1238_v8, %v1189_v9  ;;  %v1543_v11 = vpop.f32.mrb[13].mxu0 }
 0x641   :  { %v1192_v12 = vpop.f32.mrb[14].mxu0 }
 0x642   :  { %1196 = vst [vmem:[%s2167_s12] sm:$0xff] %v1190_v10  ;;  %v1193_v14 = vadd.f32 %v1238_v8, %v1192_v12  ;;  %v1544_v19 = vpop.f32.mrb[15].mxu0 }
 0x644   :  { %1197 = vst [vmem:[%s2167_s12 + $0x8] sm:$0xff] %v1193_v14 }

</bundles_post_ra>
